<compile_context>
chip_gen: v7x
topology: tpu7x:2x2x1
jax: 0.10.0
libtpu: 0.0.40
codegen_flags: <defaults>
</compile_context>

<pallas_src>
import math
import functools

import jax
import jax.numpy as jnp
from jax import lax
from jax.experimental import pallas as pl
from jax.experimental.pallas import tpu as pltpu


def _round_up(x, m):
    return ((x + m - 1) // m) * m


def _choose_q_tile(S):
    """Largest convenient query tile that divides S (8-aligned unless full)."""
    for cand in (256, 128):
        if S % cand == 0:
            return cand
    return S


def _mha_kernel(q_ref, k_ref, v_ref, bias_ref,
                wq_ref, wk_ref, wv_ref, wo_ref,
                bq_ref, bk_ref, bv_ref, bo_ref,
                out_ref, ctx_ref, *, num_heads, dk_pad):
    """Grid = (batch, query_tile). One query tile of attention per step."""
    f32 = jnp.float32
    bf16 = jnp.bfloat16

    x_q = q_ref[0]                       # (Sq, D)  bf16 (cast in wrapper)
    x_k = k_ref[0]                       # (S,  D)  bf16
    x_v = v_ref[0]                       # (S,  D)  bf16

    # Head-major, 128-lane padded projections: (*, D) @ (D, H*dk_pad), f32 acc.
    # 1/sqrt(d_k) is already folded into wq / bq by the wrapper.
    q_all = jnp.dot(x_q, wq_ref[...], preferred_element_type=f32) + bq_ref[...]
    k_all = jnp.dot(x_k, wk_ref[...], preferred_element_type=f32) + bk_ref[...]
    v_all = jnp.dot(x_v, wv_ref[...], preferred_element_type=f32) + bv_ref[...]

    # Additive mask bias (0 keep / -1e9 drop): upcast ONCE per tile, shared by
    # all heads; the add and the softmax stay in f32.
    bias = bias_ref[0].astype(f32)       # (Sq, S)

    for h in range(num_heads):           # static loop; slices are 128-aligned
        lo = h * dk_pad
        q_h = q_all[:, lo:lo + dk_pad].astype(bf16)     # (Sq, dk_pad)
        k_h = k_all[:, lo:lo + dk_pad].astype(bf16)     # (S,  dk_pad)
        v_h = v_all[:, lo:lo + dk_pad].astype(bf16)

        # Contract the last dims of q_h / k_h directly -> no explicit k.T.
        s = lax.dot_general(q_h, k_h, (((1,), (1,)), ((), ())),
                            preferred_element_type=f32)          # (Sq, S)
        s = s + bias

        # Numerically stable softmax; divide moved onto the EUP reciprocal.
        # NOTE: fully-masked rows give a uniform 1/S distribution (matches the
        # PyTorch masked_fill + softmax reference); such rows are garbage.
        s = s - jnp.max(s, axis=-1, keepdims=True)
        p = jnp.exp(s)
        inv = pl.reciprocal(jnp.sum(p, axis=-1, keepdims=True), approx=True)
        attn = (p * inv).astype(bf16)                             # (Sq, S)

        # Write this head's context into its 128-aligned slice of the VMEM
        # scratch: no jnp.concatenate, no relayout, short live ranges.
        ctx_ref[:, lo:lo + dk_pad] = jnp.dot(
            attn, v_h, preferred_element_type=f32).astype(bf16)

    # Single full-width output projection (Sq, H*dk_pad) @ (H*dk_pad, D).
    out = jnp.dot(ctx_ref[...], wo_ref[...],
                  preferred_element_type=f32) + bo_ref[...]
    out_ref[0] = out.astype(out_ref.dtype)


def multi_head_attention(q, k, v, mask, params, num_heads):
    B, S, D = q.shape
    assert D % num_heads == 0, "d_model not divisible by h"
    d_k = D // num_heads
    dk_pad = _round_up(d_k, 128)         # each head's slot is 128-lane aligned
    Dp = num_heads * dk_pad
    scale = 1.0 / math.sqrt(d_k)

    bf16 = jnp.bfloat16
    f32 = jnp.float32

    # ---- weight preprocessing (wrapper-side layout plumbing, done once) ----
    # nn.Linear stores W as [out, in]; y = x @ W.T + b.  Scatter each head's
    # d_k output columns into a zero-padded 128-lane-aligned slot, and fold the
    # 1/sqrt(d_k) attention scale into the query projection.
    def pad_cols(w_t, extra_scale=1.0):              # (D, D) -> (D, Dp) bf16
        w3 = (w_t.astype(f32) * extra_scale).reshape(D, num_heads, d_k)
        w3 = jnp.pad(w3, ((0, 0), (0, 0), (0, dk_pad - d_k)))
        return w3.reshape(D, Dp).astype(bf16)

    def pad_vec(b, extra_scale=1.0):                 # (D,) -> (1, Dp) f32
        b2 = (b.astype(f32) * extra_scale).reshape(num_heads, d_k)
        b2 = jnp.pad(b2, ((0, 0), (0, dk_pad - d_k)))
        return b2.reshape(1, Dp)

    def pad_rows(w_t):                               # (D, D) -> (Dp, D) bf16
        w3 = w_t.astype(f32).reshape(num_heads, d_k, D)
        w3 = jnp.pad(w3, ((0, 0), (0, dk_pad - d_k), (0, 0)))
        return w3.reshape(Dp, D).astype(bf16)

    wq_p = pad_cols(params["wq"].T, scale)
    wk_p = pad_cols(params["wk"].T)
    wv_p = pad_cols(params["wv"].T)
    wo_p = pad_rows(params["wo"].T)
    bq_p = pad_vec(params["bq"], scale)
    bk_p = pad_vec(params["bk"])
    bv_p = pad_vec(params["bv"])
    bo_p = params["bo"].reshape(1, D).astype(f32)

    # ---- activations / mask -------------------------------------------------
    # bf16 activations: half the HBM->VMEM DMA bytes and half the pipelined
    # VMEM footprint.  The mask becomes a bf16 additive bias (0 / -1e9).
    q_b = q.astype(bf16)
    k_b = k.astype(bf16)
    v_b = v.astype(bf16)
    assert mask.ndim == 4 and mask.shape == (B, 1, S, S), (
        "expected a broadcast-over-heads mask of shape [B, 1, S, S]")
    mask_bias = jnp.where(mask == 0, jnp.float32(-1e9),
                          jnp.float32(0.0)).reshape(B, S, S).astype(bf16)

    Sq = _choose_q_tile(S)
    n_q = S // Sq

    kernel = functools.partial(_mha_kernel, num_heads=num_heads, dk_pad=dk_pad)

    # Rough per-step VMEM footprint -> explicit scoped-VMEM limit with headroom.
    est = (
        2 * (Sq * D * 2 + 2 * S * D * 2 + Sq * S * 2 + Sq * D * 4)   # pipelined blocks (x2 bufs)
        + 2 * (3 * D * Dp * 2 + Dp * D * 2 + 3 * Dp * 4 + D * 4)     # weights / biases
        + Sq * Dp * 2                                                # ctx scratch (bf16)
        + (Sq * Dp + 2 * S * Dp) * 4                                 # q/k/v projections (f32)
        + 3 * Sq * S * 4 + Sq * Dp * 4                               # scores / softmax temps
    )
    vmem_limit = int(min(max(2 * est, 32 * 1024 * 1024), 100 * 1024 * 1024))

    return pl.pallas_call(
        kernel,
        out_shape=jax.ShapeDtypeStruct((B, S, D), jnp.float32),
        grid_spec=pltpu.PrefetchScalarGridSpec(
            num_scalar_prefetch=0,
            grid=(B, n_q),
            in_specs=[
                pl.BlockSpec((1, Sq, D), lambda b, i: (b, i, 0)),    # q tile (bf16)
                pl.BlockSpec((1, S, D), lambda b, i: (b, 0, 0)),     # k full seq (bf16)
                pl.BlockSpec((1, S, D), lambda b, i: (b, 0, 0)),     # v full seq (bf16)
                pl.BlockSpec((1, Sq, S), lambda b, i: (b, i, 0)),    # additive mask bias (bf16)
                # Weights / biases: constant index_map -> VMEM-resident across grid.
                pl.BlockSpec((D, Dp), lambda b, i: (0, 0)),          # wq (pre-scaled)
                pl.BlockSpec((D, Dp), lambda b, i: (0, 0)),          # wk
                pl.BlockSpec((D, Dp), lambda b, i: (0, 0)),          # wv
                pl.BlockSpec((Dp, D), lambda b, i: (0, 0)),          # wo
                pl.BlockSpec((1, Dp), lambda b, i: (0, 0)),          # bq (pre-scaled)
                pl.BlockSpec((1, Dp), lambda b, i: (0, 0)),          # bk
                pl.BlockSpec((1, Dp), lambda b, i: (0, 0)),          # bv
                pl.BlockSpec((1, D), lambda b, i: (0, 0)),           # bo
            ],
            out_specs=pl.BlockSpec((1, Sq, D), lambda b, i: (b, i, 0)),
            scratch_shapes=[pltpu.VMEM((Sq, Dp), jnp.bfloat16)],     # concat-free ctx
        ),
        compiler_params=pltpu.CompilerParams(
            dimension_semantics=("parallel", "parallel"),
            vmem_limit_bytes=vmem_limit),
    )(q_b, k_b, v_b, mask_bias,
      wq_p, wk_p, wv_p, wo_p, bq_p, bk_p, bv_p, bo_p)


def reference_mha(q, k, v, mask, params, num_heads):
    """Pure-JAX f32 reference matching the PyTorch forward (dropout = eval)."""
    B, S, D = q.shape
    d_k = D // num_heads

    def lin(x, w, b):
        return x @ w.T + b

    Q = lin(q, params["wq"], params["bq"])
    K = lin(k, params["wk"], params["bk"])
    V = lin(v, params["wv"], params["bv"])

    Qh = Q.reshape(B, S, num_heads, d_k).transpose(0, 2, 1, 3)
    Kh = K.reshape(B, S, num_heads, d_k).transpose(0, 2, 1, 3)
    Vh = V.reshape(B, S, num_heads, d_k).transpose(0, 2, 1, 3)

    scores = (Qh @ Kh.transpose(0, 1, 3, 2)) / math.sqrt(d_k)
    scores = jnp.where(mask == 0, -1e9, scores)
    attn = jax.nn.softmax(scores, axis=-1)
    x = attn @ Vh
    x = x.transpose(0, 2, 1, 3).reshape(B, S, D)
    return lin(x, params["wo"], params["bo"])


def init_params(key, d_model):
    """Deterministic nn.Linear-style init: U(-1/sqrt(in), 1/sqrt(in))."""
    bound = 1.0 / math.sqrt(d_model)
    keys = jax.random.split(key, 8)
    names_w = ["wq", "wk", "wv", "wo"]
    names_b = ["bq", "bk", "bv", "bo"]
    params = {}
    for i, n in enumerate(names_w):
        params[n] = jax.random.uniform(keys[i], (d_model, d_model),
                                       jnp.float32, -bound, bound)
    for i, n in enumerate(names_b):
        params[n] = jax.random.uniform(keys[4 + i], (d_model,),
                                       jnp.float32, -bound, bound)
    return params


if __name__ == "__main__":
    # NOTE: deliberately small smoke-test shapes; benchmark at S >= 512 and
    # 128-aligned d_model for meaningful performance numbers.
    B, S, D, H = 2, 8, 32, 4   # batch, seq, d_model, heads

    root = jax.random.PRNGKey(0)
    kq, kk, kv, kp = jax.random.split(root, 4)

    q = jax.random.normal(kq, (B, S, D), jnp.float32)
    k = jax.random.normal(kk, (B, S, D), jnp.float32)
    v = jax.random.normal(kv, (B, S, D), jnp.float32)

    # Causal mask, broadcast over heads: [B, 1, S, S], 1 = keep, 0 = masked.
    causal = jnp.tril(jnp.ones((S, S), jnp.int32))
    mask = jnp.broadcast_to(causal[None, None, :, :], (B, 1, S, S))

    params = init_params(kp, D)

    out = multi_head_attention(q, k, v, mask, params, H)
    out = jax.block_until_ready(out)

    ref = reference_mha(q, k, v, mask, params, H)
    assert out.shape == (B, S, D)
    # bf16 activations + weights (f32 accumulation) vs f32 reference.
    assert jnp.allclose(out, ref, atol=5e-2, rtol=5e-2), "mismatch vs reference"

    print("KERNEL_OK")
</pallas_src>

<mosaic_0001>
module attributes {stable_mosaic.version = 11 : i64} {
  func.func @_mha_kernel(%arg0: i32, %arg1: i32, %arg2: memref<1x8x32xbf16, #tpu.memory_space<vmem>>, %arg3: memref<1x8x32xbf16, #tpu.memory_space<vmem>>, %arg4: memref<1x8x32xbf16, #tpu.memory_space<vmem>>, %arg5: memref<1x8x8xbf16, #tpu.memory_space<vmem>>, %arg6: memref<32x512xbf16, #tpu.memory_space<vmem>>, %arg7: memref<32x512xbf16, #tpu.memory_space<vmem>>, %arg8: memref<32x512xbf16, #tpu.memory_space<vmem>>, %arg9: memref<512x32xbf16, #tpu.memory_space<vmem>>, %arg10: memref<1x512xf32, #tpu.memory_space<vmem>>, %arg11: memref<1x512xf32, #tpu.memory_space<vmem>>, %arg12: memref<1x512xf32, #tpu.memory_space<vmem>>, %arg13: memref<1x32xf32, #tpu.memory_space<vmem>>, %arg14: memref<1x8x32xf32, #tpu.memory_space<vmem>>, %arg15: memref<8x512xbf16, #tpu.memory_space<vmem>>) attributes {dimension_semantics = [#tpu.dimension_semantics<parallel>, #tpu.dimension_semantics<parallel>], iteration_bounds = array<i64: 2, 1>, scalar_prefetch = 0 : i64, scratch_operands = 1 : i64, tpu.core_type = #tpu.core_type<tc>, window_params = [{transform_indices = @transform_0, window_bounds = array<i64: 1, 8, 32>}, {transform_indices = @transform_1, window_bounds = array<i64: 1, 8, 32>}, {transform_indices = @transform_2, window_bounds = array<i64: 1, 8, 32>}, {transform_indices = @transform_3, window_bounds = array<i64: 1, 8, 8>}, {pipeline_mode = #tpu.pipeline_mode<synchronous>, transform_indices = @transform_4, window_bounds = array<i64: 32, 512>}, {pipeline_mode = #tpu.pipeline_mode<synchronous>, transform_indices = @transform_5, window_bounds = array<i64: 32, 512>}, {pipeline_mode = #tpu.pipeline_mode<synchronous>, transform_indices = @transform_6, window_bounds = array<i64: 32, 512>}, {pipeline_mode = #tpu.pipeline_mode<synchronous>, transform_indices = @transform_7, window_bounds = array<i64: 512, 32>}, {pipeline_mode = #tpu.pipeline_mode<synchronous>, transform_indices = @transform_8, window_bounds = array<i64: 1, 512>}, {pipeline_mode = #tpu.pipeline_mode<synchronous>, transform_indices = @transform_9, window_bounds = array<i64: 1, 512>}, {pipeline_mode = #tpu.pipeline_mode<synchronous>, transform_indices = @transform_10, window_bounds = array<i64: 1, 512>}, {pipeline_mode = #tpu.pipeline_mode<synchronous>, transform_indices = @transform_11, window_bounds = array<i64: 1, 32>}, {transform_indices = @transform_12, window_bounds = array<i64: 1, 8, 32>}]} {
    %c0 = arith.constant 0 : index
    %c0_0 = arith.constant 0 : index
    %c0_1 = arith.constant 0 : index
    %0 = vector.load %arg2[%c0, %c0_0, %c0_1] : memref<1x8x32xbf16, #tpu.memory_space<vmem>>, vector<1x8x32xbf16>
    %1 = vector.shape_cast %0 : vector<1x8x32xbf16> to vector<8x32xbf16>
    %c0_2 = arith.constant 0 : index
    %c0_3 = arith.constant 0 : index
    %c0_4 = arith.constant 0 : index
    %2 = vector.load %arg3[%c0_2, %c0_3, %c0_4] : memref<1x8x32xbf16, #tpu.memory_space<vmem>>, vector<1x8x32xbf16>
    %3 = vector.shape_cast %2 : vector<1x8x32xbf16> to vector<8x32xbf16>
    %c0_5 = arith.constant 0 : index
    %c0_6 = arith.constant 0 : index
    %c0_7 = arith.constant 0 : index
    %4 = vector.load %arg4[%c0_5, %c0_6, %c0_7] : memref<1x8x32xbf16, #tpu.memory_space<vmem>>, vector<1x8x32xbf16>
    %5 = vector.shape_cast %4 : vector<1x8x32xbf16> to vector<8x32xbf16>
    %c0_8 = arith.constant 0 : index
    %c0_9 = arith.constant 0 : index
    %6 = vector.load %arg6[%c0_8, %c0_9] : memref<32x512xbf16, #tpu.memory_space<vmem>>, vector<32x512xbf16>
    %cst = arith.constant dense<0.000000e+00> : vector<8x512xf32>
    %7 = tpu.matmul %1, %6, %cst {dimension_numbers = #tpu.dot_dimension_numbers<[1], [0], [0], [1], [0, 0, 1, 1], [], []>} : vector<8x32xbf16>, vector<32x512xbf16>, vector<8x512xf32> -> vector<8x512xf32>
    %c0_10 = arith.constant 0 : index
    %c0_11 = arith.constant 0 : index
    %8 = vector.load %arg10[%c0_10, %c0_11] : memref<1x512xf32, #tpu.memory_space<vmem>>, vector<1x512xf32>
    %9 = vector.broadcast %8 : vector<1x512xf32> to vector<8x512xf32>
    %10 = arith.addf %7, %9 : vector<8x512xf32>
    %c0_12 = arith.constant 0 : index
    %c0_13 = arith.constant 0 : index
    %11 = vector.load %arg7[%c0_12, %c0_13] : memref<32x512xbf16, #tpu.memory_space<vmem>>, vector<32x512xbf16>
    %cst_14 = arith.constant dense<0.000000e+00> : vector<8x512xf32>
    %12 = tpu.matmul %3, %11, %cst_14 {dimension_numbers = #tpu.dot_dimension_numbers<[1], [0], [0], [1], [0, 0, 1, 1], [], []>} : vector<8x32xbf16>, vector<32x512xbf16>, vector<8x512xf32> -> vector<8x512xf32>
    %c0_15 = arith.constant 0 : index
    %c0_16 = arith.constant 0 : index
    %13 = vector.load %arg11[%c0_15, %c0_16] : memref<1x512xf32, #tpu.memory_space<vmem>>, vector<1x512xf32>
    %14 = vector.broadcast %13 : vector<1x512xf32> to vector<8x512xf32>
    %15 = arith.addf %12, %14 : vector<8x512xf32>
    %c0_17 = arith.constant 0 : index
    %c0_18 = arith.constant 0 : index
    %16 = vector.load %arg8[%c0_17, %c0_18] : memref<32x512xbf16, #tpu.memory_space<vmem>>, vector<32x512xbf16>
    %cst_19 = arith.constant dense<0.000000e+00> : vector<8x512xf32>
    %17 = tpu.matmul %5, %16, %cst_19 {dimension_numbers = #tpu.dot_dimension_numbers<[1], [0], [0], [1], [0, 0, 1, 1], [], []>} : vector<8x32xbf16>, vector<32x512xbf16>, vector<8x512xf32> -> vector<8x512xf32>
    %c0_20 = arith.constant 0 : index
    %c0_21 = arith.constant 0 : index
    %18 = vector.load %arg12[%c0_20, %c0_21] : memref<1x512xf32, #tpu.memory_space<vmem>>, vector<1x512xf32>
    %19 = vector.broadcast %18 : vector<1x512xf32> to vector<8x512xf32>
    %20 = arith.addf %17, %19 : vector<8x512xf32>
    %c0_22 = arith.constant 0 : index
    %c0_23 = arith.constant 0 : index
    %c0_24 = arith.constant 0 : index
    %21 = vector.load %arg5[%c0_22, %c0_23, %c0_24] : memref<1x8x8xbf16, #tpu.memory_space<vmem>>, vector<1x8x8xbf16>
    %22 = vector.shape_cast %21 : vector<1x8x8xbf16> to vector<8x8xbf16>
    %23 = arith.extf %22 : vector<8x8xbf16> to vector<8x8xf32>
    %24 = vector.extract_strided_slice %10 {offsets = [0, 0], sizes = [8, 128], strides = [1, 1]} : vector<8x512xf32> to vector<8x128xf32>
    %25 = arith.truncf %24 : vector<8x128xf32> to vector<8x128xbf16>
    %26 = vector.extract_strided_slice %15 {offsets = [0, 0], sizes = [8, 128], strides = [1, 1]} : vector<8x512xf32> to vector<8x128xf32>
    %27 = arith.truncf %26 : vector<8x128xf32> to vector<8x128xbf16>
    %28 = vector.extract_strided_slice %20 {offsets = [0, 0], sizes = [8, 128], strides = [1, 1]} : vector<8x512xf32> to vector<8x128xf32>
    %29 = arith.truncf %28 : vector<8x128xf32> to vector<8x128xbf16>
    %cst_25 = arith.constant dense<0.000000e+00> : vector<8x8xf32>
    %30 = tpu.matmul %25, %27, %cst_25 {dimension_numbers = #tpu.dot_dimension_numbers<[1], [1], [0], [0], [0, 0, 1, 0], [], []>} : vector<8x128xbf16>, vector<8x128xbf16>, vector<8x8xf32> -> vector<8x8xf32>
    %31 = arith.addf %30, %23 : vector<8x8xf32>
    %cst_26 = arith.constant dense<0xFF800000> : vector<8xf32>
    %32 = vector.multi_reduction <maximumf>, %31, %cst_26 [1] : vector<8x8xf32> to vector<8xf32>
    %33 = vector.shape_cast %32 : vector<8xf32> to vector<8x1xf32>
    %34 = vector.broadcast %33 : vector<8x1xf32> to vector<8x8xf32>
    %35 = arith.subf %31, %34 : vector<8x8xf32>
    %36 = math.exp %35 : vector<8x8xf32>
    %cst_27 = arith.constant dense<0.000000e+00> : vector<8xf32>
    %37 = vector.multi_reduction <add>, %36, %cst_27 [1] : vector<8x8xf32> to vector<8xf32>
    %38 = vector.shape_cast %37 : vector<8xf32> to vector<8x1xf32>
    %39 = tpu.reciprocal %38 {approx = true} : vector<8x1xf32> -> vector<8x1xf32>
    %40 = vector.broadcast %39 : vector<8x1xf32> to vector<8x8xf32>
    %41 = arith.mulf %36, %40 : vector<8x8xf32>
    %42 = arith.truncf %41 : vector<8x8xf32> to vector<8x8xbf16>
    %cst_28 = arith.constant dense<0.000000e+00> : vector<8x128xf32>
    %43 = tpu.matmul %42, %29, %cst_28 {dimension_numbers = #tpu.dot_dimension_numbers<[1], [0], [0], [1], [0, 0, 1, 1], [], []>} : vector<8x8xbf16>, vector<8x128xbf16>, vector<8x128xf32> -> vector<8x128xf32>
    %44 = arith.truncf %43 : vector<8x128xf32> to vector<8x128xbf16>
    %c0_29 = arith.constant 0 : index
    %c0_30 = arith.constant 0 : index
    %45 = vector.load %arg15[%c0_29, %c0_30] : memref<8x512xbf16, #tpu.memory_space<vmem>>, vector<8x128xbf16>
    tpu.vector_store %arg15[%c0_29, %c0_30], %44 {strides = array<i32>} : memref<8x512xbf16, #tpu.memory_space<vmem>>, vector<8x128xbf16>,
    %46 = vector.extract_strided_slice %10 {offsets = [0, 128], sizes = [8, 128], strides = [1, 1]} : vector<8x512xf32> to vector<8x128xf32>
    %47 = arith.truncf %46 : vector<8x128xf32> to vector<8x128xbf16>
    %48 = vector.extract_strided_slice %15 {offsets = [0, 128], sizes = [8, 128], strides = [1, 1]} : vector<8x512xf32> to vector<8x128xf32>
    %49 = arith.truncf %48 : vector<8x128xf32> to vector<8x128xbf16>
    %50 = vector.extract_strided_slice %20 {offsets = [0, 128], sizes = [8, 128], strides = [1, 1]} : vector<8x512xf32> to vector<8x128xf32>
    %51 = arith.truncf %50 : vector<8x128xf32> to vector<8x128xbf16>
    %cst_31 = arith.constant dense<0.000000e+00> : vector<8x8xf32>
    %52 = tpu.matmul %47, %49, %cst_31 {dimension_numbers = #tpu.dot_dimension_numbers<[1], [1], [0], [0], [0, 0, 1, 0], [], []>} : vector<8x128xbf16>, vector<8x128xbf16>, vector<8x8xf32> -> vector<8x8xf32>
    %53 = arith.addf %52, %23 : vector<8x8xf32>
    %cst_32 = arith.constant dense<0xFF800000> : vector<8xf32>
    %54 = vector.multi_reduction <maximumf>, %53, %cst_32 [1] : vector<8x8xf32> to vector<8xf32>
    %55 = vector.shape_cast %54 : vector<8xf32> to vector<8x1xf32>
    %56 = vector.broadcast %55 : vector<8x1xf32> to vector<8x8xf32>
    %57 = arith.subf %53, %56 : vector<8x8xf32>
    %58 = math.exp %57 : vector<8x8xf32>
    %cst_33 = arith.constant dense<0.000000e+00> : vector<8xf32>
    %59 = vector.multi_reduction <add>, %58, %cst_33 [1] : vector<8x8xf32> to vector<8xf32>
    %60 = vector.shape_cast %59 : vector<8xf32> to vector<8x1xf32>
    %61 = tpu.reciprocal %60 {approx = true} : vector<8x1xf32> -> vector<8x1xf32>
    %62 = vector.broadcast %61 : vector<8x1xf32> to vector<8x8xf32>
    %63 = arith.mulf %58, %62 : vector<8x8xf32>
    %64 = arith.truncf %63 : vector<8x8xf32> to vector<8x8xbf16>
    %cst_34 = arith.constant dense<0.000000e+00> : vector<8x128xf32>
    %65 = tpu.matmul %64, %51, %cst_34 {dimension_numbers = #tpu.dot_dimension_numbers<[1], [0], [0], [1], [0, 0, 1, 1], [], []>} : vector<8x8xbf16>, vector<8x128xbf16>, vector<8x128xf32> -> vector<8x128xf32>
    %66 = arith.truncf %65 : vector<8x128xf32> to vector<8x128xbf16>
    %c0_35 = arith.constant 0 : index
    %c128 = arith.constant 128 : index
    %67 = vector.load %arg15[%c0_35, %c128] : memref<8x512xbf16, #tpu.memory_space<vmem>>, vector<8x128xbf16>
    tpu.vector_store %arg15[%c0_35, %c128], %66 {strides = array<i32>} : memref<8x512xbf16, #tpu.memory_space<vmem>>, vector<8x128xbf16>,
    %68 = vector.extract_strided_slice %10 {offsets = [0, 256], sizes = [8, 128], strides = [1, 1]} : vector<8x512xf32> to vector<8x128xf32>
    %69 = arith.truncf %68 : vector<8x128xf32> to vector<8x128xbf16>
    %70 = vector.extract_strided_slice %15 {offsets = [0, 256], sizes = [8, 128], strides = [1, 1]} : vector<8x512xf32> to vector<8x128xf32>
    %71 = arith.truncf %70 : vector<8x128xf32> to vector<8x128xbf16>
    %72 = vector.extract_strided_slice %20 {offsets = [0, 256], sizes = [8, 128], strides = [1, 1]} : vector<8x512xf32> to vector<8x128xf32>
    %73 = arith.truncf %72 : vector<8x128xf32> to vector<8x128xbf16>
    %cst_36 = arith.constant dense<0.000000e+00> : vector<8x8xf32>
    %74 = tpu.matmul %69, %71, %cst_36 {dimension_numbers = #tpu.dot_dimension_numbers<[1], [1], [0], [0], [0, 0, 1, 0], [], []>} : vector<8x128xbf16>, vector<8x128xbf16>, vector<8x8xf32> -> vector<8x8xf32>
    %75 = arith.addf %74, %23 : vector<8x8xf32>
    %cst_37 = arith.constant dense<0xFF800000> : vector<8xf32>
    %76 = vector.multi_reduction <maximumf>, %75, %cst_37 [1] : vector<8x8xf32> to vector<8xf32>
    %77 = vector.shape_cast %76 : vector<8xf32> to vector<8x1xf32>
    %78 = vector.broadcast %77 : vector<8x1xf32> to vector<8x8xf32>
    %79 = arith.subf %75, %78 : vector<8x8xf32>
    %80 = math.exp %79 : vector<8x8xf32>
    %cst_38 = arith.constant dense<0.000000e+00> : vector<8xf32>
    %81 = vector.multi_reduction <add>, %80, %cst_38 [1] : vector<8x8xf32> to vector<8xf32>
    %82 = vector.shape_cast %81 : vector<8xf32> to vector<8x1xf32>
    %83 = tpu.reciprocal %82 {approx = true} : vector<8x1xf32> -> vector<8x1xf32>
    %84 = vector.broadcast %83 : vector<8x1xf32> to vector<8x8xf32>
    %85 = arith.mulf %80, %84 : vector<8x8xf32>
    %86 = arith.truncf %85 : vector<8x8xf32> to vector<8x8xbf16>
    %cst_39 = arith.constant dense<0.000000e+00> : vector<8x128xf32>
    %87 = tpu.matmul %86, %73, %cst_39 {dimension_numbers = #tpu.dot_dimension_numbers<[1], [0], [0], [1], [0, 0, 1, 1], [], []>} : vector<8x8xbf16>, vector<8x128xbf16>, vector<8x128xf32> -> vector<8x128xf32>
    %88 = arith.truncf %87 : vector<8x128xf32> to vector<8x128xbf16>
    %c0_40 = arith.constant 0 : index
    %c256 = arith.constant 256 : index
    %89 = vector.load %arg15[%c0_40, %c256] : memref<8x512xbf16, #tpu.memory_space<vmem>>, vector<8x128xbf16>
    tpu.vector_store %arg15[%c0_40, %c256], %88 {strides = array<i32>} : memref<8x512xbf16, #tpu.memory_space<vmem>>, vector<8x128xbf16>,
    %90 = vector.extract_strided_slice %10 {offsets = [0, 384], sizes = [8, 128], strides = [1, 1]} : vector<8x512xf32> to vector<8x128xf32>
    %91 = arith.truncf %90 : vector<8x128xf32> to vector<8x128xbf16>
    %92 = vector.extract_strided_slice %15 {offsets = [0, 384], sizes = [8, 128], strides = [1, 1]} : vector<8x512xf32> to vector<8x128xf32>
    %93 = arith.truncf %92 : vector<8x128xf32> to vector<8x128xbf16>
    %94 = vector.extract_strided_slice %20 {offsets = [0, 384], sizes = [8, 128], strides = [1, 1]} : vector<8x512xf32> to vector<8x128xf32>
    %95 = arith.truncf %94 : vector<8x128xf32> to vector<8x128xbf16>
    %cst_41 = arith.constant dense<0.000000e+00> : vector<8x8xf32>
    %96 = tpu.matmul %91, %93, %cst_41 {dimension_numbers = #tpu.dot_dimension_numbers<[1], [1], [0], [0], [0, 0, 1, 0], [], []>} : vector<8x128xbf16>, vector<8x128xbf16>, vector<8x8xf32> -> vector<8x8xf32>
    %97 = arith.addf %96, %23 : vector<8x8xf32>
    %cst_42 = arith.constant dense<0xFF800000> : vector<8xf32>
    %98 = vector.multi_reduction <maximumf>, %97, %cst_42 [1] : vector<8x8xf32> to vector<8xf32>
    %99 = vector.shape_cast %98 : vector<8xf32> to vector<8x1xf32>
    %100 = vector.broadcast %99 : vector<8x1xf32> to vector<8x8xf32>
    %101 = arith.subf %97, %100 : vector<8x8xf32>
    %102 = math.exp %101 : vector<8x8xf32>
    %cst_43 = arith.constant dense<0.000000e+00> : vector<8xf32>
    %103 = vector.multi_reduction <add>, %102, %cst_43 [1] : vector<8x8xf32> to vector<8xf32>
    %104 = vector.shape_cast %103 : vector<8xf32> to vector<8x1xf32>
    %105 = tpu.reciprocal %104 {approx = true} : vector<8x1xf32> -> vector<8x1xf32>
    %106 = vector.broadcast %105 : vector<8x1xf32> to vector<8x8xf32>
    %107 = arith.mulf %102, %106 : vector<8x8xf32>
    %108 = arith.truncf %107 : vector<8x8xf32> to vector<8x8xbf16>
    %cst_44 = arith.constant dense<0.000000e+00> : vector<8x128xf32>
    %109 = tpu.matmul %108, %95, %cst_44 {dimension_numbers = #tpu.dot_dimension_numbers<[1], [0], [0], [1], [0, 0, 1, 1], [], []>} : vector<8x8xbf16>, vector<8x128xbf16>, vector<8x128xf32> -> vector<8x128xf32>
    %110 = arith.truncf %109 : vector<8x128xf32> to vector<8x128xbf16>
    %c0_45 = arith.constant 0 : index
    %c384 = arith.constant 384 : index
    %111 = vector.load %arg15[%c0_45, %c384] : memref<8x512xbf16, #tpu.memory_space<vmem>>, vector<8x128xbf16>
    tpu.vector_store %arg15[%c0_45, %c384], %110 {strides = array<i32>} : memref<8x512xbf16, #tpu.memory_space<vmem>>, vector<8x128xbf16>,
    %c0_46 = arith.constant 0 : index
    %c0_47 = arith.constant 0 : index
    %112 = vector.load %arg15[%c0_46, %c0_47] : memref<8x512xbf16, #tpu.memory_space<vmem>>, vector<8x512xbf16>
    %c0_48 = arith.constant 0 : index
    %c0_49 = arith.constant 0 : index
    %113 = vector.load %arg9[%c0_48, %c0_49] : memref<512x32xbf16, #tpu.memory_space<vmem>>, vector<512x32xbf16>
    %cst_50 = arith.constant dense<0.000000e+00> : vector<8x32xf32>
    %114 = tpu.matmul %112, %113, %cst_50 {dimension_numbers = #tpu.dot_dimension_numbers<[1], [0], [0], [1], [0, 0, 1, 1], [], []>} : vector<8x512xbf16>, vector<512x32xbf16>, vector<8x32xf32> -> vector<8x32xf32>
    %c0_51 = arith.constant 0 : index
    %c0_52 = arith.constant 0 : index
    %115 = vector.load %arg13[%c0_51, %c0_52] : memref<1x32xf32, #tpu.memory_space<vmem>>, vector<1x32xf32>
    %116 = vector.broadcast %115 : vector<1x32xf32> to vector<8x32xf32>
    %117 = arith.addf %114, %116 : vector<8x32xf32>
    %c0_53 = arith.constant 0 : index
    %c0_54 = arith.constant 0 : index
    %c0_55 = arith.constant 0 : index
    %118 = vector.load %arg14[%c0_53, %c0_54, %c0_55] : memref<1x8x32xf32, #tpu.memory_space<vmem>>, vector<1x8x32xf32>
    %119 = vector.shape_cast %118 : vector<1x8x32xf32> to vector<8x32xf32>
    %120 = vector.shape_cast %117 : vector<8x32xf32> to vector<1x8x32xf32>
    tpu.vector_store %arg14[%c0_53, %c0_54, %c0_55], %120 {strides = array<i32>} : memref<1x8x32xf32, #tpu.memory_space<vmem>>, vector<1x8x32xf32>,
    return
  }
  func.func @transform_0(%arg0: i32, %arg1: i32) -> (i32, i32, i32) {
    %c0_i32 = arith.constant 0 : i32
    %c0_i32_0 = arith.constant 0 : i32
    return %arg0, %arg1, %c0_i32 : i32, i32, i32
  }
  func.func @transform_1(%arg0: i32, %arg1: i32) -> (i32, i32, i32) {
    %c0_i32 = arith.constant 0 : i32
    %c0_i32_0 = arith.constant 0 : i32
    %c0_i32_1 = arith.constant 0 : i32
    return %arg0, %c0_i32, %c0_i32_0 : i32, i32, i32
  }
  func.func @transform_2(%arg0: i32, %arg1: i32) -> (i32, i32, i32) {
    %c0_i32 = arith.constant 0 : i32
    %c0_i32_0 = arith.constant 0 : i32
    %c0_i32_1 = arith.constant 0 : i32
    return %arg0, %c0_i32, %c0_i32_0 : i32, i32, i32
  }
  func.func @transform_3(%arg0: i32, %arg1: i32) -> (i32, i32, i32) {
    %c0_i32 = arith.constant 0 : i32
    %c0_i32_0 = arith.constant 0 : i32
    return %arg0, %arg1, %c0_i32 : i32, i32, i32
  }
  func.func @transform_4(%arg0: i32, %arg1: i32) -> (i32, i32) {
    %c0_i32 = arith.constant 0 : i32
    %c0_i32_0 = arith.constant 0 : i32
    %c0_i32_1 = arith.constant 0 : i32
    return %c0_i32, %c0_i32_0 : i32, i32
  }
  func.func @transform_5(%arg0: i32, %arg1: i32) -> (i32, i32) {
    %c0_i32 = arith.constant 0 : i32
    %c0_i32_0 = arith.constant 0 : i32
    %c0_i32_1 = arith.constant 0 : i32
    return %c0_i32, %c0_i32_0 : i32, i32
  }
  func.func @transform_6(%arg0: i32, %arg1: i32) -> (i32, i32) {
    %c0_i32 = arith.constant 0 : i32
    %c0_i32_0 = arith.constant 0 : i32
    %c0_i32_1 = arith.constant 0 : i32
    return %c0_i32, %c0_i32_0 : i32, i32
  }
  func.func @transform_7(%arg0: i32, %arg1: i32) -> (i32, i32) {
    %c0_i32 = arith.constant 0 : i32
    %c0_i32_0 = arith.constant 0 : i32
    %c0_i32_1 = arith.constant 0 : i32
    return %c0_i32, %c0_i32_0 : i32, i32
  }
  func.func @transform_8(%arg0: i32, %arg1: i32) -> (i32, i32) {
    %c0_i32 = arith.constant 0 : i32
    %c0_i32_0 = arith.constant 0 : i32
    %c0_i32_1 = arith.constant 0 : i32
    return %c0_i32, %c0_i32_0 : i32, i32
  }
  func.func @transform_9(%arg0: i32, %arg1: i32) -> (i32, i32) {
    %c0_i32 = arith.constant 0 : i32
    %c0_i32_0 = arith.constant 0 : i32
    %c0_i32_1 = arith.constant 0 : i32
    return %c0_i32, %c0_i32_0 : i32, i32
  }
  func.func @transform_10(%arg0: i32, %arg1: i32) -> (i32, i32) {
    %c0_i32 = arith.constant 0 : i32
    %c0_i32_0 = arith.constant 0 : i32
    %c0_i32_1 = arith.constant 0 : i32
    return %c0_i32, %c0_i32_0 : i32, i32
  }
  func.func @transform_11(%arg0: i32, %arg1: i32) -> (i32, i32) {
    %c0_i32 = arith.constant 0 : i32
    %c0_i32_0 = arith.constant 0 : i32
    %c0_i32_1 = arith.constant 0 : i32
    return %c0_i32, %c0_i32_0 : i32, i32
  }
  func.func @transform_12(%arg0: i32, %arg1: i32) -> (i32, i32, i32) {
    %c0_i32 = arith.constant 0 : i32
    %c0_i32_0 = arith.constant 0 : i32
    return %arg0, %arg1, %c0_i32 : i32, i32, i32
  }
}

</mosaic_0001>

<bundles_post_ra>
// kernel: tpu_custom_call.1
= control target key start
LH: loop header
LB: loop body
LE: loop exit
PB: predicated region body
PF: predicated region fallthrough
CT: control target
= control target key end

     0   :  { %17 = vsyncpa [#allocation4], 0  ;;  %s2733_s0 = inlined_call_operand.vmem [shape: bf16[2,8,32], index: 0, kind: input, shape index: {}]   ;;  %s2734_s1 = inlined_call_operand.vmem [shape: bf16[2,8,32], index: 1, kind: input, shape index: {}]   ;;  %s2735_s2 = inlined_call_operand.vmem [shape: bf16[2,8,32], index: 2, kind: input, shape index: {}]   ;;  %s2736_s3 = inlined_call_operand.vmem [shape: bf16[2,8,8], index: 3, kind: input, shape index: {}]   ;;  %s2737_s4 = inlined_call_operand.vmem [shape: bf16[32,512], index: 4, kind: input, shape index: {}]   ;;  %s2738_s5 = inlined_call_operand.vmem [shape: bf16[32,512], index: 5, kind: input, shape index: {}]   ;;  %s2739_s6 = inlined_call_operand.vmem [shape: bf16[32,512], index: 6, kind: input, shape index: {}]   ;;  %s2740_s7 = inlined_call_operand.vmem [shape: bf16[512,32], index: 7, kind: input, shape index: {}]   ;;  %s2741_s8 = inlined_call_operand.vmem [shape: f32[1,512], index: 8, kind: input, shape index: {}]   ;;  %s2742_s9 = inlined_call_operand.vmem [shape: f32[1,512], index: 9, kind: input, shape index: {}]   ;;  %s2743_s10 = inlined_call_operand.vmem [shape: f32[1,512], index: 10, kind: input, shape index: {}]   ;;  %s2744_s11 = inlined_call_operand.vmem [shape: f32[1,32], index: 11, kind: input, shape index: {}]   ;;  %s2745_s12 = inlined_call_operand.hbm [shape: f32[2,8,32], index: 12, kind: output, shape index: {}]  }
   0x1   :  { %19 = vsyncpa [#allocation4 + $0x1], 0  ;;  %s2355_s21 = smov 0   ;;  %s2357_s22 = smov 0  }
   0x2   :  { %s2359_s23 = smov 0   ;;  %s2361_s24 = smov 0  }
   0x3   :  { %s2363_s25 = smov 0   ;;  %s2365_s26 = smov 0  }
   0x4 LB: > { %2749 = sst [smem:[#allocation6_spill]] %s2272_s23  ;;  %s1867_s27 = sadd.s32 4294967295, %s2284_s26   ;;  %s2284_s26 = sphi %s2365_s26, %s25_s26   ;;  %s2280_s25 = sphi %s2363_s25, %s2758_s25   ;;  %s2276_s24 = sphi %s2361_s24, %s2757_s24   ;;  %s2272_s23 = sphi %s2359_s23, %s2756_s23   ;;  %s2268_s22 = sphi %s2357_s22, %s2760_s22   ;;  %s2264_s21 = sphi %s2355_s21, %s2759_s21  }
   0x5   : > { %2750 = sst [smem:[#allocation7_spill]] %s2280_s25  ;;  %s1868_s28 = sadd.s32 4294967294, %s2284_s26  }
   0x6   : > { %s37_s29 = sadd.s32 1, %s2280_s25  ;;  %s322_s30 = sadd.s32 1, %s2272_s23 }
   0x7   : > { %p39_p0 = scmp.ge.s32.totalorder %s37_s29, 2  ;;  %p332_p1 = scmp.ne.s32.totalorder %s2272_s23, %s2268_s22 }
   0x8   : > { %p333_p2 = scmp.eq.s32.totalorder %s1867_s27, 1  ;;  %p338_p3 = scmp.ne.s32.totalorder %s2268_s22, %s2264_s21 }
   0x9   : > { %s2762_s29 = smov (%p39_p0, %s37_s29), 0  ;;  %p339_p5 = scmp.eq.s32.totalorder %s1868_s28, 1 }
   0xa   : > { %2751 = sst [smem:[#allocation8_spill]] %s2762_s29  ;;  %p2395_p4 = por %p333_p2, %p332_p1 }
   0xb   : > { %s317_s14 = ssub.s32 %s2280_s25, %s2762_s29  ;;  %p1871_p6 = scmp.ge.s32.totalorder %s2284_s26, 1 }
   0xc   : > { %p320_p7 = scmp.eq.s32.totalorder %s317_s14, 0  ;;  %p2402_p8 = por %p339_p5, %p338_p3 }
   0xd   : > { %p415_p9 = scmp.lt.s32.totalorder %s2284_s26, 3 }
   0xe   : > { %s2408_s16 = scalar_select %p320_p7, %s2272_s23, %s322_s30  }
   0xf   : > { %p416_p10 = pnand %p1871_p6, %p415_p9 }
  0x10   : > { %2754 = sst [smem:[#allocation9_spill]] %s2408_s16  ;;  %v2118_v0 = vld [vmem:[%s2737_s4 + $0x4] ss:$16 sps:$4 sm:$0xff] (!%p416_p10)   ;;  %p474_p11 = scmp.lt.s32.totalorder (!%p416_p10), %s2276_s24, 1  ;;  %v2120_v1 = vld [vmem:[%s2737_s4] ss:$16 sps:$4 sm:$0xff] (!%p416_p10)   ;;  %v510_v29 = vlaneseq (!%p416_p10) }
  0x11   : > { %419 = sbr.rel (%p416_p10) target bundleno = 1270 (0x4f6), region = 68  ;;  %v2286_v2 = vmov (!%p416_p10), 0   ;;  %574 = vmatprep.subr.bf16.mxu0 (!%p416_p10), %v2118_v0  ;;  %v2121_v3 = vld [vmem:[%s2737_s4 + $0x24] ss:$16 sps:$4 sm:$0xff] (!%p416_p10)   ;;  %v2123_v4 = vld [vmem:[%s2737_s4 + $0x20] ss:$16 sps:$4 sm:$0xff] (!%p416_p10)  }
  0x12   : > { %606 = vmatprep.mubr.bf16.mxu0 (!%p416_p10), %v2286_v2  ;;  %647 = vmatprep.mubr.bf16.mxu1 (!%p416_p10), %v2286_v2  ;;  %v2126_v5 = vld [vmem:[%s2738_s5 + $0x4] ss:$16 sps:$4 sm:$0xff] (!%p416_p10)   ;;  %v2124_v6 = vld [vmem:[%s2738_s5] ss:$16 sps:$4 sm:$0xff] (!%p416_p10)   ;;  %v2130_v7 = vld [vmem:[%s2737_s4 + $0xc] ss:$16 sps:$4 sm:$0xff] (!%p416_p10)  }
  0x13   : > { %575 = vmatpush1.bf16.msra.mxu0 (!%p416_p10), %v2120_v1  ;;  %v2132_v8 = vld [vmem:[%s2737_s4 + $0x8] ss:$16 sps:$4 sm:$0xff] (!%p416_p10)   ;;  %vm570_vm0 = vcmask (!%p416_p10), 261120   ;;  %v2129_v10 = vld [vmem:[%s2738_s5 + $0x24] ss:$16 sps:$4 sm:$0xff] (!%p416_p10)   ;;  %615 = vmatprep.subr.bf16.mxu1 (!%p416_p10), %v2130_v7  ;;  %v2287_v24 = vmov (!%p416_p10), 0.0  }
  0x14   : > { %576 = vmatprep.subr.bf16.mxu0 (!%p416_p10), %v2121_v3  ;;  %v2133_v11 = vld [vmem:[%s2737_s4 + $0x2c] ss:$16 sps:$4 sm:$0xff] (!%p416_p10)   ;;  %616 = vmatpush1.bf16.msra.mxu1 (!%p416_p10), %v2132_v8  ;;  %v2135_v12 = vld [vmem:[%s2737_s4 + $0x28] ss:$16 sps:$4 sm:$0xff] (!%p416_p10)   ;;  %v2127_v14 = vld [vmem:[%s2738_s5 + $0x20] ss:$16 sps:$4 sm:$0xff] (!%p416_p10)  }
  0x15   : > { %617 = vmatprep.subr.bf16.mxu1 (!%p416_p10), %v2133_v11  ;;  %v2138_v13 = vld [vmem:[%s2738_s5 + $0xc] ss:$16 sps:$4 sm:$0xff] (!%p416_p10)   ;;  %v2136_v15 = vld [vmem:[%s2738_s5 + $0x8] ss:$16 sps:$4 sm:$0xff] (!%p416_p10)   ;;  %v2144_v17 = vld [vmem:[%s2739_s6 + $0x4] ss:$16 sps:$4 sm:$0xff] (!%p416_p10)  }
  0x16   : > { %v2141_v16 = vld [vmem:[%s2738_s5 + $0x2c] ss:$16 sps:$4 sm:$0xff] (!%p416_p10)   ;;  %v2142_v19 = vld [vmem:[%s2739_s6] ss:$16 sps:$4 sm:$0xff] (!%p416_p10)   ;;  %v2139_v20 = vld [vmem:[%s2738_s5 + $0x28] ss:$16 sps:$4 sm:$0xff] (!%p416_p10)  }
  0x17   : > { %577 = vmatpush1.bf16.msra.mxu0 (!%p416_p10), %v2123_v4  ;;  %v2147_v21 = vld [vmem:[%s2739_s6 + $0x24] ss:$16 sps:$4 sm:$0xff] (!%p416_p10)   ;;  %v2145_v22 = vld [vmem:[%s2739_s6 + $0x20] ss:$16 sps:$4 sm:$0xff] (!%p416_p10)   ;;  %vm2288_vm1 = vmmov (!%p416_p10), 0   ;;  %v511_v30 = vshrl.u32 (!%p416_p10), %v510_v29, 7 }
  0x18   : > { %s475_s30 = scalar_select %p474_p11, %s2276_s24, 1  ;;  %729 = vmatprep.subr.bf16.mxu0 %v2126_v5  ;;  %618 = vmatpush1.bf16.msra.mxu1 %v2135_v12  ;;  %v2148_v25 = vld [vmem:[%s2739_s6 + $0x8] ss:$16 sps:$4 sm:$0xff]   ;;  %v2150_v26 = vld [vmem:[%s2739_s6 + $0xc] ss:$16 sps:$4 sm:$0xff]   ;;  %vm1027_vm2 = vcmask 1043456  }
  0x19   : > { %770 = vmatprep.subr.bf16.mxu1 %v2138_v13  ;;  %v2153_v27 = vld [vmem:[%s2739_s6 + $0x2c] ss:$16 sps:$4 sm:$0xff]   ;;  %v2151_v28 = vld [vmem:[%s2739_s6 + $0x28] ss:$16 sps:$4 sm:$0xff]   ;;  %v664_v34 = vld [vmem:[%s2742_s9] sm:$0xf] }
  0x1a   : > { %s2424_s18 = sshll.u32 %s475_s30, 2  ;;  %v512_v35 = vsub.s32 0, %v511_v30  ;;  %v508_v39 = vld [vmem:[%s2741_s8] sm:$0xf]  ;;  %v2516_v43 = vsub.s32 1, %v511_v30  ;;  %v2520_v55 = vsub.s32 2, %v511_v30 }
  0x1b   : > { %s480_s27 = scalar_lea.vmem %s2733_s0, %s2424_s18  ;;  %s484_s14 = scalar_lea.vmem %s2734_s1, %s2424_s18  ;;  %v2527_v1 = vsub.s32 3, %v511_v30  ;;  %v2540_v13 = vld [vmem:[%s2743_s10] sm:$0xf]  ;;  %vm1011_vm3 = vcmask 64512  }
  0x1c   : > { %v497_v9 = vld [vmem:[%s480_s27] sm:$0xf]  ;;  %s488_s27 = scalar_lea.vmem %s2735_s2, %s2424_s18  ;;  %v669_v37 = vrot.slane %v664_v34, %v512_v35  ;;  %v513_v47 = vrot.slane %v508_v39, %v512_v35  ;;  %v673_v50 = vrot.slane %v664_v34, %v2516_v43  ;;  %v677_v58 = vrot.slane %v664_v34, %v2520_v55  ;;  %s495_s25 = scalar_lea.vmem %s2736_s3, %s2424_s18 }
  0x1d   : > { %1885 = vmatmul.mubr.msk.bf16.vlgmr.msra.gmra.mrb[0].mxu0 %vm570_vm0, %v497_v9  ;;  %v498_v18 = vld [vmem:[%s484_s14] sm:$0xf]  ;;  %1886 = vmatmul.mubr.msk.bf16.vlgmr.msra.gmra.mrb[0].mxu1 %vm570_vm0, %v497_v9  ;;  %v517_v61 = vrot.slane %v508_v39, %v2516_v43  ;;  %v521_v4 = vrot.slane %v508_v39, %v2520_v55  ;;  %v681_v5 = vrot.slane %v664_v34, %v2527_v1  ;;  %s471_s28 = sand.u32 1, %s2268_s22   ;;  %s1949_s29 = sshll.u32 %s2276_s24, 7 }
  0x1e   : > { %730 = vmatpush1.bf16.msra.mxu0 %v2124_v6  ;;  %761 = vmatprep.mubr.bf16.mxu0 %v2286_v2  ;;  %v499_v23 = vld [vmem:[%s488_s27] sm:$0xf]  ;;  %v525_v9 = vrot.slane %v508_v39, %v2527_v1  ;;  %s1872_s27 = sshll.u32 %s471_s28, 3  ;;  %s2685_s16 = scalar_lea.hbm %s2745_s12, %s1949_s29 }
  0x1f   : > { %731 = vmatprep.subr.bf16.mxu0 %v2129_v10  ;;  %771 = vmatpush1.bf16.msra.mxu1 %v2136_v15  ;;  %s473_s19 = scalar_lea.vmem [#allocation3], %s1872_s27  ;;  %s1743_s24 = scalar_lea.sflag [#allocation4], %s471_s28 }
  0x20   : > { %802 = vmatprep.mubr.bf16.mxu1 %v2286_v2  ;;  %772 = vmatprep.subr.bf16.mxu1 %v2141_v16  ;;  %s1757_s14 = sshll.u32 %s473_s19, 4  ;;  %s2289_s20 = smov [#allocation3]   ;;  %s2687_s14 = int_to_ptr.vmem [resolvable:$true] %s1757_s14 }
  0x21   : > { %s2206_s23 = scalar_lea.vmem %s2687_s14, 128  ;;  %s2210_s27 = sshll.u32 %s2289_s20, 4  ;;  %s2211_s27 = int_to_ptr.vmem [resolvable:$false] %s2210_s27 }
  0x22   : > { %732 = vmatpush1.bf16.msra.mxu0 %v2127_v14  ;;  %v824_v14 = vrot.slane %v2540_v13, %v512_v35  ;;  %p2207_p12 = scmp.ne.s32.totalorder %s2687_s14, %s2206_s23  ;;  %s2212_s30 = scalar_lea.vmem %s2211_s27, 256 }
  0x23   : > { %884 = vmatprep.subr.bf16.mxu0 %v2144_v17  ;;  %773 = vmatpush1.bf16.msra.mxu1 %v2139_v20  ;;  %p2213_p1 = scmp.lt.s32.totalorder %s2687_s14, %s2211_s27  ;;  %p2214_p2 = scmp.lt.s32.totalorder %s2212_s30, %s2206_s23 }
  0x24   : > { %925 = vmatprep.subr.bf16.mxu1 %v2150_v26  ;;  %p2208_p13 = pnand %p2207_p12, %p2395_p4 }
  0x25   : > { %1895 = vmatmul.mubr.msk.bf16.vlgmr.msra.gmra.mrb[4].mxu0 %vm570_vm0, %v498_v18  ;;  %p2215_p3 = por %p2214_p2, %p2213_p1 }
  0x26   : > { %885 = vmatpush1.bf16.msra.mxu0 %v2142_v19  ;;  %916 = vmatprep.mubr.bf16.mxu0 %v2286_v2  ;;  %p2209_p0 = pneg %p2208_p13 }
  0x27   : > { %1896 = vmatmul.mubr.msk.bf16.vlgmr.msra.gmra.mrb[4].mxu1 %vm570_vm0, %v498_v18  ;;  %886 = vmatprep.subr.bf16.mxu0 %v2147_v21 }
  0x28   : > { %957 = vmatprep.mubr.bf16.mxu1 %v2286_v2  ;;  %926 = vmatpush1.bf16.msra.mxu1 %v2148_v25  ;;  %p2216_p5 = pnand %p2215_p3, %p2209_p0 }
  0x29   : > { %927 = vmatprep.subr.bf16.mxu1 %v2153_v27 }
  0x2a   : > { %887 = vmatpush1.bf16.msra.mxu0 %v2145_v22  ;;  %v966_v22 = vld [vmem:[%s495_s25] sm:$0xf] }
  0x2b   : > { %2012 = vmatprep.subr.bf16.mxu0 %v2287_v24 }
  0x2c   : > { %928 = vmatpush1.bf16.msra.mxu1 %v2151_v28 }
  0x2d   : > { %1905 = vmatmul.mubr.msk.bf16.vlgmr.msra.gmra.mrb[8].mxu0 %vm570_vm0, %v499_v23  ;;  %2018 = vmatprep.subr.bf16.mxu1 %v2287_v24 }
  0x2e   : > { %2014 = vmatprep.mubr.msk.bf16.mxu0 %vm2288_vm1, %v2287_v24 }
  0x2f   : > { %1906 = vmatmul.mubr.msk.bf16.vlgmr.msra.gmra.mrb[8].mxu1 %vm570_vm0, %v499_v23  ;;  %v967_v23 = vunpack.c.l.bf16 %v966_v22 }
  0x30   : > { %2020 = vmatprep.mubr.msk.bf16.mxu1 %vm2288_vm1, %v2287_v24 }
  0xf0   : > { %v608_v31 = vpop.f32.mrb[0].mxu0  ;;  %v649_v38 = vpop.f32.mrb[0].mxu1 }
  0xf1   : > { %v610_v32 = vpop.f32.mrb[1].mxu0  ;;  %v651_v40 = vpop.f32.mrb[1].mxu1  ;;  %v609_v52 = vadd.f32 %v608_v31, %v513_v47  ;;  %v650_v6 = vadd.f32 %v649_v38, %v521_v4 }
  0xf2   : > { %v612_v33 = vpop.f32.mrb[2].mxu0  ;;  %v653_v42 = vpop.f32.mrb[2].mxu1  ;;  %v611_v0 = vadd.f32 %v610_v32, %v517_v61  ;;  %v652_v11 = vadd.f32 %v651_v40, %v525_v9 }
  0xf3   : > { %v613_v36 = vpop.f32.mrb[3].mxu0  ;;  %v654_v46 = vpop.f32.mrb[3].mxu1  ;;  %v968_v60 = vpack.c.bf16 %v609_v52, %v609_v52  ;;  %v1176_v8 = vpack.c.bf16 %v650_v6, %v650_v6 }
  0xf4   : > { %v1073_v3 = vpack.c.bf16 %v611_v0, %v611_v0  ;;  %v1279_v12 = vpack.c.bf16 %v652_v11, %v652_v11 }
  0xf8   : > { %v763_v41 = vpop.f32.mrb[4].mxu0 }
  0xf9   : > { %v764_v44 = vadd.f32 %v763_v41, %v669_v37  ;;  %v765_v45 = vpop.f32.mrb[5].mxu0 }
  0xfa   : > { %v767_v48 = vpop.f32.mrb[6].mxu0  ;;  %v804_v53 = vpop.f32.mrb[4].mxu1  ;;  %v766_v54 = vadd.f32 %v765_v45, %v673_v50 }
  0xfb   : > { %v969_v49 = vpack.c.bf16 %v764_v44, %v764_v44  ;;  %v768_v51 = vpop.f32.mrb[7].mxu0  ;;  %v806_v56 = vpop.f32.mrb[5].mxu1  ;;  %v805_v63 = vadd.f32 %v804_v53, %v677_v58 }
  0xfc   : > { %v808_v57 = vpop.f32.mrb[6].mxu1  ;;  %v1074_v62 = vpack.c.bf16 %v766_v54, %v766_v54  ;;  %v807_v7 = vadd.f32 %v806_v56, %v681_v5 }
  0xfd   : > { %2013 = vmatpush3.bf16.xpose.msra.mxu0 %v969_v49  ;;  %v809_v59 = vpop.f32.mrb[7].mxu1  ;;  %v1177_v2 = vpack.c.bf16 %v805_v63, %v805_v63 }
  0xfe   : > { %2024 = vmatprep.subr.bf16.mxu0 %v2287_v24  ;;  %v1280_v10 = vpack.c.bf16 %v807_v7, %v807_v7 }
 0x100   : > { %v918_v15 = vpop.f32.mrb[8].mxu0 }
 0x101   : > { %v919_v16 = vadd.f32 %v918_v15, %v824_v14  ;;  %v2543_v17 = vpop.f32.mrb[9].mxu0  ;;  %v2155_v14 = vld [vmem:[%s2740_s7] sm:$0xff]   ;;  %v2156_v15 = vld [vmem:[%s2740_s7 + $0x48] sm:$0xff]  }
 0x102   : > { %v922_v18 = vpop.f32.mrb[10].mxu0 }
 0x103   : > { %v970_v19 = vpack.c.bf16 %v919_v16, %v919_v16  ;;  %v923_v20 = vpop.f32.mrb[11].mxu0  ;;  %v2157_v16 = vld [vmem:[%s2740_s7 + $0x8] sm:$0xff]   ;;  %v2158_v18 = vld [vmem:[%s2740_s7 + $0x50] sm:$0xff]  }
 0x104   : > { %2015 = vmatmul.mubr.bf16.vlgmr.msra.gmra.mrb[12].mxu0 %v968_v60 }
 0x105   : > { %2025 = vmatpush3.bf16.xpose.msra.mxu0 %v1074_v62  ;;  %2026 = vmatprep.mubr.msk.bf16.mxu0 %vm2288_vm1, %v2287_v24  ;;  %v1029_v21 = vsel %vm1027_vm2, %v970_v19, 0  ;;  %v2159_v19 = vld [vmem:[%s2740_s7 + $0x10] sm:$0xff]  }
 0x106   : > { %2036 = vmatprep.subr.bf16.mxu0 %v2287_v24  ;;  %2019 = vmatpush3.bf16.msra.mxu1 %v1029_v21  ;;  %v828_v21 = vrot.slane %v2540_v13, %v2516_v43 }
 0x107   : > { %2030 = vmatprep.subr.bf16.mxu1 %v2287_v24 }
 0x108   : > { %v921_v22 = vadd.f32 %v2543_v17, %v828_v21 }
 0x10c   : > { %2027 = vmatmul.mubr.bf16.vlgmr.msra.gmra.mrb[16].mxu0 %v1073_v3 }
 0x10d   : > { %2037 = vmatpush3.bf16.xpose.msra.mxu0 %v1177_v2  ;;  %2038 = vmatprep.mubr.msk.bf16.mxu0 %vm2288_vm1, %v2287_v24 }
 0x10e   : > { %2048 = vmatprep.subr.bf16.mxu0 %v2287_v24 }
 0x114   : > { %2039 = vmatmul.mubr.bf16.vlgmr.msra.gmra.mrb[20].mxu0 %v1176_v8  ;;  %v959_v8 = vpop.f32.mrb[8].mxu1 }
 0x115   : > { %2049 = vmatpush3.bf16.xpose.msra.mxu0 %v1280_v10  ;;  %2050 = vmatprep.mubr.msk.bf16.mxu0 %vm2288_vm1, %v2287_v24  ;;  %v961_v9 = vpop.f32.mrb[9].mxu1 }
 0x116   : > { %v963_v10 = vpop.f32.mrb[10].mxu1 }
 0x117   : > { %v964_v11 = vpop.f32.mrb[11].mxu1 }
 0x11c   : > { %2051 = vmatmul.mubr.bf16.vlgmr.msra.gmra.mrb[24].mxu0 %v1279_v12  ;;  %v2154_v12 = vld [vmem:[%s2740_s7 + $0x40] sm:$0xff]  }
 0x11d   : > { %1968 = vmatprep.subr.bf16.mxu0 %v2154_v12 }
 0x11e   : > { %1969 = vmatpush3.bf16.msra.mxu0 %v2155_v14 }
 0x11f   : > { %1970 = vmatprep.subr.bf16.mxu0 %v2156_v15 }
 0x122   : > { %1971 = vmatpush3.bf16.msra.mxu0 %v2157_v16 }
 0x123   : > { %1972 = vmatprep.subr.bf16.mxu0 %v2158_v18 }
 0x126   : > { %1973 = vmatpush3.bf16.msra.mxu0 %v2159_v19 }
 0x1d7   : > { %v1005_v25 = vpop.f32.mrb[12].mxu0 }
 0x1d8   : > { %v1006_v26 = vadd.f32 %v1005_v25, %v967_v23  ;;  %v2016_v27 = vpop.f32.mrb[13].mxu0  ;;  %v832_v25 = vrot.slane %v2540_v13, %v2520_v55 }
 0x1d9   : > { %v1008_v28 = vpop.f32.mrb[14].mxu0  ;;  %v1075_v27 = vpack.c.bf16 %v921_v22, %v921_v22 }
 0x1da   : > { %v2017_v29 = vpop.f32.mrb[15].mxu0  ;;  %v1012_v30 = vsel %vm1011_vm3, %v1006_v26, -inf }
 0x1db   : > { %1013 = vmax.xlane.f32.xlu0 %v1012_v30  ;;  %v960_v29 = vadd.f32 %v959_v8, %v832_v25 }
 0x1dd   : > { %v1178_v43 = vpack.c.bf16 %v960_v29, %v960_v29 }
 0x1df   : > { %v1110_v31 = vpop.f32.mrb[16].mxu0 }
 0x1e0   : > { %v1111_v32 = vadd.f32 %v1110_v31, %v967_v23  ;;  %v2028_v33 = vpop.f32.mrb[17].mxu0  ;;  %v1132_v31 = vsel %vm1027_vm2, %v1075_v27, 0 }
 0x1e1   : > { %v1113_v34 = vpop.f32.mrb[18].mxu0  ;;  %v836_v33 = vrot.slane %v2540_v13, %v2527_v1 }
 0x1e2   : > { %v2029_v35 = vpop.f32.mrb[19].mxu0  ;;  %v1116_v36 = vsel %vm1011_vm3, %v1111_v32, -inf  ;;  %v1235_v34 = vsel %vm1027_vm2, %v1178_v43, 0 }
 0x1e3   : > { %1117 = vmax.xlane.f32.xlu0 %v1116_v36  ;;  %v962_v36 = vadd.f32 %v961_v9, %v836_v33 }
 0x1e7   : > { %v1213_v37 = vpop.f32.mrb[20].mxu0 }
 0x1e8   : > { %v1214_v38 = vadd.f32 %v1213_v37, %v967_v23  ;;  %v2040_v39 = vpop.f32.mrb[21].mxu0 }
 0x1e9   : > { %v1216_v40 = vpop.f32.mrb[22].mxu0 }
 0x1ea   : > { %v2041_v41 = vpop.f32.mrb[23].mxu0  ;;  %v1219_v42 = vsel %vm1011_vm3, %v1214_v38, -inf  ;;  %v1281_v40 = vpack.c.bf16 %v962_v36, %v962_v36 }
 0x1eb   : > { %1220 = vmax.xlane.f32.xlu1 %v1219_v42 }
 0x1ec   : > { %v1338_v1 = vsel %vm1027_vm2, %v1281_v40, 0 }
 0x1ef   : > { %v1316_v44 = vpop.f32.mrb[24].mxu0 }
 0x1f0   : > { %v1317_v45 = vadd.f32 %v1316_v44, %v967_v23  ;;  %v2052_v46 = vpop.f32.mrb[25].mxu0 }
 0x1f1   : > { %v1319_v47 = vpop.f32.mrb[26].mxu0  ;;  %v2161_v46 = vld [vmem:[%s2740_s7 + $0x18] sm:$0xff]  }
 0x1f2   : > { %v2053_v48 = vpop.f32.mrb[27].mxu0  ;;  %v1322_v49 = vsel %vm1011_vm3, %v1317_v45, -inf  ;;  %v2162_v47 = vld [vmem:[%s2740_s7 + $0x60] sm:$0xff]  }
 0x1f3   : > { %1323 = vmax.xlane.f32.xlu1 %v1322_v49  ;;  %v2164_v48 = vld [vmem:[%s2740_s7 + $0x20] sm:$0xff]  }
 0x1f4   : > { %v2165_v49 = vld [vmem:[%s2740_s7 + $0x80] sm:$0xff]  }
 0x268   : > { %v1014_v50 = vpop.xlane.xlu0 %1013 }
 0x269   : > { %v1015_v51 = vsub.f32 %v1006_v26, %v1014_v50  ;;  %v2166_v50 = vld [vmem:[%s2740_s7 + $0x68] sm:$0xff]  }
 0x26b   : > { %v1016_v52 = vmul.f32 1.442695, %v1015_v51  ;;  %v2167_v51 = vld [vmem:[%s2740_s7 + $0xc8] sm:$0xff]  }
 0x26d   : > { %2190 = vpow2.f32 %v1016_v52  ;;  %v2168_v52 = vld [vmem:[%s2740_s7 + $0x28] sm:$0xff]  }
 0x270   : > { %v1118_v53 = vpop.xlane.xlu0 %1117 }
 0x271   : > { %v1119_v54 = vsub.f32 %v1111_v32, %v1118_v53  ;;  %v2169_v53 = vld [vmem:[%s2740_s7 + $0x88] sm:$0xff]  }
 0x273   : > { %v1120_v56 = vmul.f32 1.442695, %v1119_v54  ;;  %v2170_v54 = vld [vmem:[%s2740_s7 + $0x70] sm:$0xff]  }
 0x275   : > { %2192 = vpow2.f32 %v1120_v56  ;;  %v2171_v56 = vld [vmem:[%s2740_s7 + $0xd0] sm:$0xff]  }
 0x277   : > { %v2191_v57 = vpop.eup %2190 }
 0x278   : > { %v1221_v58 = vpop.xlane.xlu1 %1220  ;;  %v1018_v59 = vsel %vm1011_vm3, %v2191_v57, 0.0 }
 0x279   : > { %v1222_v60 = vsub.f32 %v1214_v38, %v1221_v58  ;;  %1019 = vadd.xlane.f32.xlu0 %v1018_v59  ;;  %v2173_v58 = vld [vmem:[%s2740_s7 + $0x90] sm:$0xff]   ;;  %v2174_v59 = vld [vmem:[%s2740_s7 + $0x78] sm:$0xff]  }
 0x27b   : > { %v1223_v61 = vmul.f32 1.442695, %v1222_v60  ;;  %v2175_v60 = vld [vmem:[%s2740_s7 + $0xd8] sm:$0xff]  }
 0x27d   : > { %2194 = vpow2.f32 %v1223_v61  ;;  %v2176_v61 = vld [vmem:[%s2740_s7 + $0x38] sm:$0xff]  }
 0x27f   : > { %v2193_v62 = vpop.eup %2192 }
 0x280   : > { %v1324_v63 = vpop.xlane.xlu1 %1323  ;;  %v1122_v0 = vsel %vm1011_vm3, %v2193_v62, 0.0 }
 0x281   : > { %v1325_v2 = vsub.f32 %v1317_v45, %v1324_v63  ;;  %1123 = vadd.xlane.f32.xlu1 %v1122_v0  ;;  %v2160_v45 = vld [vmem:[%s2740_s7 + $0x58] sm:$0xff]   ;;  %v2180_v63 = vld [vmem:[%s2740_s7 + $0xe0] sm:$0xff]  }
 0x282   : > { %1974 = vmatprep.subr.bf16.mxu0 %v2160_v45  ;;  %v2181_v0 = vld [vmem:[%s2740_s7 + $0xa0] sm:$0xff]  }
 0x283   : > { %v1326_v3 = vmul.f32 1.442695, %v1325_v2  ;;  %1975 = vmatpush3.bf16.msra.mxu0 %v2161_v46  ;;  %v2182_v2 = vld [vmem:[%s2740_s7 + $0xe8] sm:$0xff]  }
 0x284   : > { %1976 = vmatprep.subr.bf16.mxu0 %v2162_v47 }
 0x285   : > { %2196 = vpow2.f32 %v1326_v3  ;;  %v2183_v3 = vld [vmem:[%s2740_s7 + $0xa8] sm:$0xff]  }
 0x287   : > { %v2195_v4 = vpop.eup %2194  ;;  %1977 = vmatpush3.bf16.msra.mxu0 %v2164_v48 }
 0x288   : > { %v1225_v5 = vsel %vm1011_vm3, %v2195_v4, 0.0  ;;  %1978 = vmatprep.subr.bf16.mxu0 %v2166_v50 }
 0x289   : > { %1226 = vadd.xlane.f32.xlu0 %v1225_v5  ;;  %v2185_v5 = vld [vmem:[%s2740_s7 + $0xb0] sm:$0xff]  }
 0x28b   : > { %1979 = vmatpush3.bf16.msra.mxu0 %v2168_v52 }
 0x28c   : > { %1980 = vmatprep.subr.bf16.mxu0 %v2170_v54 }
 0x28f   : > { %v2197_v6 = vpop.eup %2196 }
 0x290   : > { %v1328_v7 = vsel %vm1011_vm3, %v2197_v6, 0.0 }
 0x291   : > { %1329 = vadd.xlane.f32.xlu1 %v1328_v7  ;;  %v2187_v7 = vld [vmem:[%s2740_s7 + $0xb8] sm:$0xff]  }
 0x306   : > { %v1020_v20 = vpop.xlane.xlu0 %1019 }
 0x307   : > { %2198 = vrcp.f32 %v1020_v20 }
 0x30e   : > { %v1124_v23 = vpop.xlane.xlu1 %1123 }
 0x30f   : > { %2200 = vrcp.f32 %v1124_v23 }
 0x311   : > { %v2199_v26 = vpop.eup %2198 }
 0x312   : > { %v1022_v28 = vmul.f32 %v2199_v26, %v2191_v57  ;;  %v2172_v57 = vld [vmem:[%s2740_s7 + $0x30] sm:$0xff]  }
 0x313   : > { %1981 = vmatpush3.bf16.msra.mxu0 %v2172_v57 }
 0x314   : > { %v1023_v30 = vpack.c.bf16 %v1022_v28, %v1022_v28  ;;  %1982 = vmatprep.subr.bf16.mxu0 %v2174_v59 }
 0x316   : > { %2021 = vmatmul.mubr.msk.bf16.vlgmr.msra.gmra.mrb[12].mxu1 %vm1011_vm3, %v1023_v30  ;;  %v1227_v32 = vpop.xlane.xlu0 %1226 }
 0x317   : > { %2031 = vmatpush3.bf16.msra.mxu1 %v1132_v31  ;;  %2202 = vrcp.f32 %v1227_v32  ;;  %2032 = vmatprep.mubr.msk.bf16.mxu1 %vm2288_vm1, %v2287_v24 }
 0x318   : > { %2042 = vmatprep.subr.bf16.mxu1 %v2287_v24  ;;  %1983 = vmatpush3.bf16.msra.mxu0 %v2176_v61 }
 0x319   : > { %v2201_v17 = vpop.eup %2200 }
 0x31a   : > { %v1126_v55 = vmul.f32 %v2201_v17, %v2193_v62  ;;  %v2177_v62 = vld [vmem:[%s2740_s7 + $0x98] sm:$0xff]  }
 0x31c   : > { %v1127_v35 = vpack.c.bf16 %v1126_v55, %v1126_v55 }
 0x31e   : > { %2033 = vmatmul.mubr.msk.bf16.vlgmr.msra.gmra.mrb[16].mxu1 %vm1011_vm3, %v1127_v35  ;;  %v1330_v37 = vpop.xlane.xlu1 %1329 }
 0x31f   : > { %2204 = vrcp.f32 %v1330_v37  ;;  %2043 = vmatpush3.bf16.msra.mxu1 %v1235_v34  ;;  %2044 = vmatprep.mubr.msk.bf16.mxu1 %vm2288_vm1, %v2287_v24 }
 0x320   : > { %2054 = vmatprep.subr.bf16.mxu1 %v2287_v24 }
 0x321   : > { %v2203_v38 = vpop.eup %2202 }
 0x322   : > { %v1229_v39 = vmul.f32 %v2203_v38, %v2195_v4  ;;  %v2184_v4 = vld [vmem:[%s2740_s7 + $0xf0] sm:$0xff]  }
 0x324   : > { %v1230_v41 = vpack.c.bf16 %v1229_v39, %v1229_v39  ;;  %v1911_v39 = vld [vmem:[%s2744_s11] ss:$0 sm:$0xff] }
 0x326   : > { %2045 = vmatmul.mubr.msk.bf16.vlgmr.msra.gmra.mrb[20].mxu1 %vm1011_vm3, %v1230_v41 }
 0x327   : > { %2055 = vmatpush3.bf16.msra.mxu1 %v1338_v1  ;;  %2056 = vmatprep.mubr.msk.bf16.mxu1 %vm2288_vm1, %v2287_v24  ;;  %v2163_v24 = vld [vmem:[%s2740_s7 + $0xc0] sm:$0xff]  }
 0x328   : > { %1990 = vmatprep.subr.bf16.mxu1 %v2163_v24 }
 0x329   : > { %v2205_v13 = vpop.eup %2204 }
 0x32a   : > { %v1332_v42 = vmul.f32 %v2205_v13, %v2197_v6  ;;  %v2186_v6 = vld [vmem:[%s2740_s7 + $0xf8] sm:$0xff]  }
 0x32c   : > { %v1333_v44 = vpack.c.bf16 %v1332_v42, %v1332_v42 }
 0x32e   : > { %2057 = vmatmul.mubr.msk.bf16.vlgmr.msra.gmra.mrb[24].mxu1 %vm1011_vm3, %v1333_v44 }
 0x32f   : > { %1991 = vmatpush3.bf16.msra.mxu1 %v2165_v49 }
 0x330   : > { %1992 = vmatprep.subr.bf16.mxu1 %v2167_v51 }
 0x333   : > { %1993 = vmatpush3.bf16.msra.mxu1 %v2169_v53 }
 0x334   : > { %1994 = vmatprep.subr.bf16.mxu1 %v2171_v56 }
 0x337   : > { %1995 = vmatpush3.bf16.msra.mxu1 %v2173_v58 }
 0x338   : > { %1996 = vmatprep.subr.bf16.mxu1 %v2175_v60 }
 0x33b   : > { %1997 = vmatpush3.bf16.msra.mxu1 %v2177_v62 }
 0x33c   : > { %1998 = vmatprep.subr.bf16.mxu1 %v2180_v63 }
 0x33f   : > { %1999 = vmatpush3.bf16.msra.mxu1 %v2181_v0 }
 0x340   : > { %2000 = vmatprep.subr.bf16.mxu1 %v2182_v2 }
 0x343   : > { %2001 = vmatpush3.bf16.msra.mxu1 %v2183_v3 }
 0x344   : > { %2002 = vmatprep.subr.bf16.mxu1 %v2184_v4 }
 0x347   : > { %2003 = vmatpush3.bf16.msra.mxu1 %v2185_v5 }
 0x348   : > { %2004 = vmatprep.subr.bf16.mxu1 %v2186_v6 }
 0x34b   : > { %2005 = vmatpush3.bf16.msra.mxu1 %v2187_v7 }
 0x3e9   : > { %v1065_v8 = vpop.f32.mrb[12].mxu1 }
 0x3ea   : > { %v1071_v9 = vpack.c.bf16 %v1065_v8, %v1065_v8  ;;  %v2022_v10 = vpop.f32.mrb[13].mxu1 }
 0x3eb   : > { %v1068_v11 = vpop.f32.mrb[14].mxu1 }
 0x3ec   : > { %1072 = vst [vmem:[#allocation2] sm:$0xf] %v1071_v9  ;;  %v2023_v12 = vpop.f32.mrb[15].mxu1 }
 0x3f1   : > { %v1168_v14 = vpop.f32.mrb[16].mxu1 }
 0x3f2   : > { %v1174_v15 = vpack.c.bf16 %v1168_v14, %v1168_v14  ;;  %v2034_v16 = vpop.f32.mrb[17].mxu1 }
 0x3f3   : > { %v1171_v18 = vpop.f32.mrb[18].mxu1 }
 0x3f4   : > { %1175 = vst [vmem:[#allocation2 + $0x4] sm:$0xf] %v1174_v15  ;;  %v2035_v19 = vpop.f32.mrb[19].mxu1 }
 0x3f9   : > { %v1271_v20 = vpop.f32.mrb[20].mxu1 }
 0x3fa   : > { %v1277_v21 = vpack.c.bf16 %v1271_v20, %v1271_v20  ;;  %v2046_v22 = vpop.f32.mrb[21].mxu1 }
 0x3fb   : > { %v1274_v23 = vpop.f32.mrb[22].mxu1  ;;  %v1382_v25 = vld [vmem:[#allocation2] sm:$0xff] }
 0x3fc   : > { %1278 = vst [vmem:[#allocation2 + $0x8] sm:$0xf] %v1277_v21  ;;  %v2047_v26 = vpop.f32.mrb[23].mxu1  ;;  %v1912_v27 = vcombine.low %v1382_v25, %v1382_v25  ;;  %v1913_v28 = vcombine.high %v1382_v25, %v1382_v25 }
 0x3fe   : > { %1693 = vmatprep.mubr.bf16.mxu0 %v1913_v28 }
 0x3ff   : > { %1694 = vmatmul.mubr.bf16.vlgmr.msra.gmra.mrb[28].mxu0 %v1912_v27 }
 0x401   : > { %v1374_v29 = vpop.f32.mrb[24].mxu1 }
 0x402   : > { %v1380_v30 = vpack.c.bf16 %v1374_v29, %v1374_v29  ;;  %v2058_v31 = vpop.f32.mrb[25].mxu1 }
 0x403   : > { %v1377_v32 = vpop.f32.mrb[26].mxu1 }
 0x404   : > { %1381 = vst [vmem:[#allocation2 + $0xc] sm:$0xf] %v1380_v30  ;;  %v2059_v43 = vpop.f32.mrb[27].mxu1 }
 0x40b   : > { %v1383_v17 = vld [vmem:[#allocation2 + $0x8] sm:$0xff] }
 0x40c   : > { %v1914_v55 = vcombine.low %v1383_v17, %v1383_v17  ;;  %v1915_v33 = vcombine.high %v1383_v17, %v1383_v17 }
 0x40e   : > { %1733 = vmatprep.mubr.bf16.mxu1 %v1915_v33 }
 0x40f   : > { %1734 = vmatmul.mubr.bf16.vlgmr.msra.gmra.mrb[28].mxu1 %v1914_v55 }
 0x4d2   : > { %v1984_v34 = vpop.f32.mrb[28].mxu0 }
 0x4d3   : > { %v1985_v35 = vpop.f32.mrb[29].mxu0 }
 0x4d4   : > { %v1986_v36 = vadd.f32 %v1985_v35, %v1984_v34  ;;  %v1987_v37 = vpop.f32.mrb[30].mxu0 }
 0x4d5   : > { %v1988_v38 = vpop.f32.mrb[31].mxu0 }
 0x4d6   : > { %v1696_v1 = vadd.f32 %v1986_v36, %v1911_v39 }
 0x4e2   : > { %v2006_v40 = vpop.f32.mrb[28].mxu1 }
 0x4e3   : > { %v2007_v41 = vpop.f32.mrb[29].mxu1 }
 0x4e4   : > { %v2008_v13 = vadd.f32 %v2007_v41, %v2006_v40  ;;  %v2009_v42 = vpop.f32.mrb[30].mxu1 }
 0x4e5   : > { %v2010_v44 = vpop.f32.mrb[31].mxu1 }
 0x4e6   : > { %v1736_v45 = vadd.f32 %v2008_v13, %v1696_v1 }
 0x4e8   : > { %1741 = vst.msk [vmem:[%s473_s19] sm:$0xff] %vm570_vm0, %v1736_v45 }
 0x4e9   : > { %2219 = shalt.err (!%p2216_p5)
}
 0x4ea   : > { %s2220_s28 = scalar_lea.hbm %s2685_s16, 128  ;;  %s2224_s19 = scalar_lea.hbm %s2745_s12, 256 }
 0x4eb   : > { %p2221_p6 = scmp.ne.s32.totalorder %s2685_s16, %s2220_s28  ;;  %p2225_p10 = scmp.lt.u32.totalorder %s2685_s16, %s2745_s12 }
 0x4ec   : > { %p2226_p11 = scmp.lt.u32.totalorder %s2224_s19, %s2220_s28  ;;  %p2228_p13 = scmp.lt.u32.totalorder %s2220_s28, %s2685_s16 }
 0x4ed   : > { %p2222_p7 = pnand %p2221_p6, %p2395_p4 }
 0x4ee   : > { %p2227_p12 = por %p2226_p11, %p2225_p10 }
 0x4ef   : > { %p2223_p9 = pneg %p2222_p7 }
 0x4f0   : > { %p2229_p0 = por %p2228_p13, %p2227_p12 }
 0x4f2   : > { %p2230_p1 = pnand %p2229_p0, %p2223_p9 }
 0x4f4   : > { %2233 = shalt.err (!%p2230_p1)
}
 0x4f5   : > { %2060 = dma.vmem_to_hbm [thread:$0]  (%p2395_p4), %s2687_s14, 128, %s2685_s16, %s1743_s24  }
 0x4f6 PF: > { %p2066_p2 = scmp.ge.s32.totalorder %s2284_s26, 2  ;;  %s1769_s23 = sand.u32 1, %s2264_s21  }
 0x4f7   : > { %s1770_s20 = scalar_lea.sflag [#allocation4], %s1769_s23 }
 0x4f8   : > { %p2063_p3 = pnand %p2066_p2, %p2402_p8 }
 0x4fa   : > { %2259 = dma.done.wait (!%p2063_p3), %s1770_s20, 128  }
 0x4fb   : > { %2261 = vsyncadd (!%p2063_p3), %s1770_s20, 4294967168  ;;  %s25_s26 = sadd.s32 1, %s2284_s26   ;;  %s2755_s27 = sld [smem:[#allocation6_spill]] }
 0x4fc   : > { %p22_p5 = scmp.ge.s32.totalorder %s25_s26, 4   ;;  %s2756_s23 = sld [smem:[#allocation9_spill]] }
 0x4fd   : > { %s2757_s24 = sld [smem:[#allocation7_spill]]  ;;  %s2758_s25 = sld [smem:[#allocation8_spill]] }
 0x4fe   : > { %s2759_s21 = smov %s2268_s22  ;;  %24 = sbr.rel (!%p22_p5) target bundleno = 4 (0x4), region = 112 }
 0x501   : > { %s2760_s22 = smov %s2755_s27 }
 0x505   :  { %1775 = vsyncpa [#allocation4], 1 }
 0x506   :  { %1777 = vsyncpa [#allocation4 + $0x1], 1 }

</bundles_post_ra>
